<compile_context>
chip_gen: v6e
topology: v6e:2x2x1
jax: 0.10.0
libtpu: 0.0.40
codegen_flags: <defaults>
</compile_context>

<pallas_src>
import jax
import jax.numpy as jnp
from jax.experimental import pallas as pl
from jax.experimental.pallas import tpu as pltpu

NEG_BIG = -1e30  # logit/mask value for padded lanes (exp -> 0)


# ----------------------------- wrapper -------------------------------------

def densenet_forward(x, cities, zipcodes, params, cfg):
    """x: [B, N, d_model] f32, cities/zipcodes: [B, N] int32 -> [B, N, num_classes]."""
    H = cfg["hidden_dim"]
    nc = cfg["num_classes"]
    H2, H3 = 2 * H, 3 * H
    B, N, _ = x.shape

    HP = max(128, pl.cdiv(H2, 128) * 128)           # 128-aligned q/k/v chunk width
    NC_PAD = max(128, pl.cdiv(nc, 128) * 128)       # padded class lanes for the head
    OUT_W = max(128, pl.cdiv(N * nc, 128) * 128)    # packed per-element output width

    # ---- glue (embedding gather + concat) stays in plain JAX ----------------
    city_emb = jnp.take(params["city_embed"], cities, axis=0)
    zip_emb = jnp.take(params["zip_embed"], zipcodes, axis=0)
    feat = jnp.concatenate([x, city_emb, zip_emb], axis=-1).astype(jnp.bfloat16)
    fin = feat.shape[-1]

    # ---- fold / pad / pack parameters (done once, outside the kernel) -------
    def bn_affine(gamma, beta, mean, var, eps=1e-5):
        scale = gamma / jnp.sqrt(var + eps)
        return scale, beta - mean * scale

    bn1_s, bn1_sh = bn_affine(*params["bn1"])
    bn2_s, bn2_sh = bn_affine(*params["bn2"])
    bn4_s, bn4_sh = bn_affine(*params["bn4"])

    def pack_qkv(w, b, temperature):
        # fused q|k|v Linear; each chunk zero-padded to HP output lanes so the
        # kernel slices at 128-aligned boundaries; 1/temperature folded into q.
        wq, wk, wv = w[:, :H2], w[:, H2:2 * H2], w[:, 2 * H2:3 * H2]
        bq, bk, bv = b[:H2], b[H2:2 * H2], b[2 * H2:3 * H2]
        wq, bq = wq / temperature, bq / temperature
        pw = lambda m: jnp.pad(m, ((0, 0), (0, HP - H2)))
        pb = lambda v: jnp.pad(v, (0, HP - H2))
        return (jnp.concatenate([pw(wq), pw(wk), pw(wv)], axis=1),   # [D, 3*HP]
                jnp.concatenate([pb(bq), pb(bk), pb(bv)], axis=0))   # [3*HP]

    a1_qkv_w, a1_qkv_b = pack_qkv(params["a1_lin_w"], params["a1_lin_b"], float(H2) ** 0.5)
    a2_qkv_w, a2_qkv_b = pack_qkv(params["a2_lin_w"], params["a2_lin_b"], float(H3) ** 0.5)

    # attention output projections: pad the 2H input rows to HP (v was zero-padded)
    a1_fc_w = jnp.pad(params["a1_fc_w"], ((0, HP - H2), (0, 0)))     # [HP, 2H]
    a2_fc_w = jnp.pad(params["a2_fc_w"], ((0, HP - H2), (0, 0)))     # [HP, 3H]

    # fold bn4 into fc4 (no nonlinearity in between)
    fc4_w = params["fc4_w"] * bn4_s[None, :]
    fc4_b = params["fc4_b"] * bn4_s + bn4_sh

    # fold the linear-linear mlp head into a single [2H, nc] projection
    head_w = params["mlp1_w"] @ params["mlp2_w"]
    head_b = params["mlp1_b"] @ params["mlp2_w"] + params["mlp2_b"]
    head_w = jnp.pad(head_w, ((0, 0), (0, NC_PAD - nc)))
    head_b = jnp.pad(head_b, (0, NC_PAD - nc), constant_values=NEG_BIG)

    # bf16 MXU operands (element-wise math stays f32 inside the kernel)
    w_mats = [params["fc1_w"], a1_qkv_w, a1_fc_w,
              params["fc2_w"], a2_qkv_w, a2_fc_w,
              fc4_w, head_w]
    w_mats = [w.astype(jnp.bfloat16) for w in w_mats]

    # pack every bias / BN-affine vector into one [NV, VEC_W] f32 buffer
    vec_entries = [
        ("fc1_b", params["fc1_b"], H2),
        ("a1_qkv_b", a1_qkv_b, 3 * HP),
        ("a1_fc_b", params["a1_fc_b"], H2),
        ("bn1_s", bn1_s, H2), ("bn1_sh", bn1_sh, H2),
        ("fc2_b", params["fc2_b"], H3),
        ("a2_qkv_b", a2_qkv_b, 3 * HP),
        ("a2_fc_b", params["a2_fc_b"], H3),
        ("bn2_s", bn2_s, H3), ("bn2_sh", bn2_sh, H3),
        ("fc4_b", fc4_b, H2),
        ("head_b", head_b, NC_PAD),
    ]
    VIDX = {name: i for i, (name, _, _) in enumerate(vec_entries)}
    VW = {name: w for (name, _, w) in vec_entries}
    VEC_W = max(128, pl.cdiv(max(VW.values()), 128) * 128)

    def _row(v):
        v = jnp.asarray(v, jnp.float32).reshape(-1)
        return jnp.pad(v, (0, VEC_W - v.shape[0]))

    vecbuf = jnp.stack([_row(v) for (_, v, _) in vec_entries], axis=0)  # [NV, VEC_W]

    # ---- generation-aware VMEM limit and batch tile --------------------------
    try:
        info = pltpu.get_tpu_info()
        vmem_cap = int(getattr(info, "vmem_capacity_bytes", 0)) or 64 * 1024 * 1024
    except Exception:
        vmem_cap = 64 * 1024 * 1024                   # conservative (v7x-sized)
    vmem_limit = min(vmem_cap // 2, 64 * 1024 * 1024)  # 64 MiB on v5e/v6e, 32 MiB on v7x

    R_TARGET = 512                                    # rows (TB*N) per grid step
    TB = max(1, min(B, R_TARGET // max(N, 1)))

    def _step_bytes(tb):
        r = tb * N
        return (2 * tb * N * 128 * 2                  # feat tile (lane-padded, 2 buffers)
                + 2 * tb * OUT_W * 4                  # packed output (2 buffers)
                + 2 * r * r * 4                       # block-diag mask (2 buffers)
                + 3 * r * r * 4                       # score / prob temporaries
                + 8 * r * max(3 * HP, NC_PAD) * 4)    # activation temporaries

    while TB > 1 and _step_bytes(TB) > vmem_limit // 2:
        TB //= 2
    if B >= 2 and pl.cdiv(B, TB) < 2:                 # >= 2 grid steps -> both v7x TCs busy
        TB = pl.cdiv(B, 2)

    Bp = pl.cdiv(B, TB) * TB
    if Bp > B:
        feat = jnp.pad(feat, ((0, Bp - B), (0, 0), (0, 0)))
    R = TB * N

    # block-diagonal attention mask (rows interact only within the same element)
    bid = jnp.arange(R, dtype=jnp.int32) // N
    neg_mask = jnp.where(bid[:, None] == bid[None, :], 0.0, NEG_BIG).astype(jnp.float32)

    # ----------------------------- kernel ------------------------------------
    def kernel(feat_ref, vec_ref, mask_ref,
               fc1_w_r, a1_qkv_w_r, a1_fc_w_r,
               fc2_w_r, a2_qkv_w_r, a2_fc_w_r,
               fc4_w_r, head_w_r,
               out_ref):

        def vec(name):
            i = VIDX[name]
            return vec_ref[i:i + 1, :VW[name]]           # [1, width] f32

        mask = mask_ref[...]                             # [R, R] f32

        def attention(xf, qkv_w, fc_w, qkv_b, fc_b):
            """xf: [R, D] f32 -> [R, D] f32 (output projection + residual)."""
            xb = xf.astype(jnp.bfloat16)
            qkv = jnp.dot(xb, qkv_w, preferred_element_type=jnp.float32) + qkv_b
            q = qkv[:, 0:HP].astype(jnp.bfloat16)        # 128-aligned lane slices
            k = qkv[:, HP:2 * HP].astype(jnp.bfloat16)
            v = qkv[:, 2 * HP:3 * HP].astype(jnp.bfloat16)
            # single [R, R] score matmul; block-diagonal mask keeps elements
            # independent (1/temperature already folded into the q projection).
            s = jax.lax.dot_general(q, k, (((1,), (1,)), ((), ())),
                                    preferred_element_type=jnp.float32)
            s = s + mask
            s = s - jnp.max(s, axis=-1, keepdims=True)
            p = jnp.exp(s)
            p = p * pl.reciprocal(jnp.sum(p, axis=-1, keepdims=True), approx=True)
            # TODO(synk): nn.Dropout(0.1) on attention probs is identity in eval mode.
            o = jnp.dot(p.astype(jnp.bfloat16), v, preferred_element_type=jnp.float32)
            return (jnp.dot(o.astype(jnp.bfloat16), fc_w,
                            preferred_element_type=jnp.float32) + fc_b + xf)

        feat_tile = feat_ref[...].reshape(R, fin)        # bf16 [R, fin]

        # fc1 -> attn1 -> bn1 -> relu
        f1 = jnp.dot(feat_tile, fc1_w_r[...],
                     preferred_element_type=jnp.float32) + vec("fc1_b")
        f1 = attention(f1, a1_qkv_w_r[...], a1_fc_w_r[...],
                       vec("a1_qkv_b"), vec("a1_fc_b"))
        f1 = jnp.maximum(f1 * vec("bn1_s") + vec("bn1_sh"), 0.0)

        # fc2 -> attn2 -> bn2 -> relu
        f2 = jnp.dot(f1.astype(jnp.bfloat16), fc2_w_r[...],
                     preferred_element_type=jnp.float32) + vec("fc2_b")
        f2 = attention(f2, a2_qkv_w_r[...], a2_fc_w_r[...],
                       vec("a2_qkv_b"), vec("a2_fc_b"))
        f2 = jnp.maximum(f2 * vec("bn2_s") + vec("bn2_sh"), 0.0)

        # fc4 (bn4 folded) -> relu
        f4 = jnp.maximum(
            jnp.dot(f2.astype(jnp.bfloat16), fc4_w_r[...],
                    preferred_element_type=jnp.float32) + vec("fc4_b"), 0.0)

        # folded mlp head (padded class lanes carry -1e30 logits)
        logits = jnp.dot(f4.astype(jnp.bfloat16), head_w_r[...],
                         preferred_element_type=jnp.float32) + vec("head_b")

        # exact final class softmax (row sums must equal 1)
        logits = logits - jnp.max(logits, axis=-1, keepdims=True)
        e = jnp.exp(logits)
        probs = e / jnp.sum(e, axis=-1, keepdims=True)   # [R, NC_PAD] f32

        # pack [TB*N, nc] -> lane-dense [TB, 1, N*nc] (zero-padded to OUT_W)
        probs_b = probs.reshape(TB, N, NC_PAD)
        out_ref[...] = jnp.zeros((TB, 1, OUT_W), jnp.float32)
        for n in range(N):                               # static, small
            out_ref[:, :, n * nc:(n + 1) * nc] = probs_b[:, n:n + 1, :nc]

    # ----------------------------- launch -------------------------------------
    feat_spec = pl.BlockSpec((TB, N, fin), lambda b: (b, 0, 0))
    vec_spec = pl.BlockSpec(vecbuf.shape, lambda b: (0, 0))
    mask_spec = pl.BlockSpec((R, R), lambda b: (0, 0))
    w_specs = [pl.BlockSpec(w.shape, lambda b: (0, 0)) for w in w_mats]
    out_spec = pl.BlockSpec((TB, 1, OUT_W), lambda b: (b, 0, 0))

    out = pl.pallas_call(
        kernel,
        out_shape=jax.ShapeDtypeStruct((Bp, 1, OUT_W), jnp.float32),
        grid_spec=pltpu.PrefetchScalarGridSpec(
            num_scalar_prefetch=0,
            grid=(Bp // TB,),
            in_specs=[feat_spec, vec_spec, mask_spec] + w_specs,
            out_specs=out_spec),
        compiler_params=pltpu.CompilerParams(
            dimension_semantics=("parallel",),           # batch elements independent
            vmem_limit_bytes=int(vmem_limit)),
    )(feat, vecbuf, neg_mask, *w_mats)

    return out[:B, 0, :N * nc].reshape(B, N, nc)


# ----------------------------- params -------------------------------------

def init_params(key, cfg):
    d, e, H = cfg["d_model"], cfg["embed_dim"], cfg["hidden_dim"]
    city_num, zip_num, nc = cfg["city_num"], cfg["zip_num"], cfg["num_classes"]
    fin = d + 2 * e
    ks = iter(jax.random.split(key, 32))

    def lin(k, fan_in, fan_out):
        return 0.1 * jax.random.normal(k, (fan_in, fan_out), jnp.float32)

    def vec(k, n):
        return 0.01 * jax.random.normal(k, (n,), jnp.float32)

    def bn(n):  # gamma, beta, running_mean, running_var (fresh PyTorch init)
        return (jnp.ones((n,), jnp.float32), jnp.zeros((n,), jnp.float32),
                jnp.zeros((n,), jnp.float32), jnp.ones((n,), jnp.float32))

    return {
        "city_embed": jax.random.normal(next(ks), (city_num, e), jnp.float32),
        "zip_embed": jax.random.normal(next(ks), (zip_num, e), jnp.float32),
        "fc1_w": lin(next(ks), fin, 2 * H), "fc1_b": vec(next(ks), 2 * H),
        "a1_lin_w": lin(next(ks), 2 * H, 6 * H), "a1_lin_b": vec(next(ks), 6 * H),
        "a1_fc_w": lin(next(ks), 2 * H, 2 * H), "a1_fc_b": vec(next(ks), 2 * H),
        "bn1": bn(2 * H),
        "fc2_w": lin(next(ks), 2 * H, 3 * H), "fc2_b": vec(next(ks), 3 * H),
        "a2_lin_w": lin(next(ks), 3 * H, 6 * H), "a2_lin_b": vec(next(ks), 6 * H),
        "a2_fc_w": lin(next(ks), 2 * H, 3 * H), "a2_fc_b": vec(next(ks), 3 * H),
        "bn2": bn(3 * H),
        "fc4_w": lin(next(ks), 3 * H, 2 * H), "fc4_b": vec(next(ks), 2 * H),
        "bn4": bn(2 * H),
        "mlp1_w": lin(next(ks), 2 * H, H), "mlp1_b": vec(next(ks), H),
        "mlp2_w": lin(next(ks), H, nc), "mlp2_b": vec(next(ks), nc),
    }


# ----------------------------- main ----------------------------------------

if __name__ == "__main__":
    cfg = dict(d_model=8, embed_dim=4, hidden_dim=16,
               city_num=10, zip_num=10, num_classes=4)
    B, N = 2, 8

    key = jax.random.PRNGKey(0)
    k_p, k_x, k_c, k_z = jax.random.split(key, 4)

    params = init_params(k_p, cfg)
    x = jax.random.normal(k_x, (B, N, cfg["d_model"]), jnp.float32)
    cities = jax.random.randint(k_c, (B, N), 0, cfg["city_num"], jnp.int32)
    zipcodes = jax.random.randint(k_z, (B, N), 0, cfg["zip_num"], jnp.int32)

    out = densenet_forward(x, cities, zipcodes, params, cfg)
    out = jax.block_until_ready(out)

    assert out.shape == (B, N, cfg["num_classes"])
    # probabilities from the final (exact) softmax must sum to 1 per (b, n)
    assert bool(jnp.allclose(jnp.sum(out, axis=-1), 1.0, atol=1e-5))
    print("KERNEL_OK")
</pallas_src>

<mosaic_0001>
module attributes {stable_mosaic.version = 11 : i64} {
  func.func @kernel(%arg0: i32, %arg1: memref<1x8x16xbf16, #tpu.memory_space<vmem>>, %arg2: memref<12x384xf32, #tpu.memory_space<vmem>>, %arg3: memref<8x8xf32, #tpu.memory_space<vmem>>, %arg4: memref<16x32xbf16, #tpu.memory_space<vmem>>, %arg5: memref<32x384xbf16, #tpu.memory_space<vmem>>, %arg6: memref<128x32xbf16, #tpu.memory_space<vmem>>, %arg7: memref<32x48xbf16, #tpu.memory_space<vmem>>, %arg8: memref<48x384xbf16, #tpu.memory_space<vmem>>, %arg9: memref<128x48xbf16, #tpu.memory_space<vmem>>, %arg10: memref<48x32xbf16, #tpu.memory_space<vmem>>, %arg11: memref<32x128xbf16, #tpu.memory_space<vmem>>, %arg12: memref<1x1x128xf32, #tpu.memory_space<vmem>>) attributes {dimension_semantics = [#tpu.dimension_semantics<parallel>], iteration_bounds = array<i64: 2>, scalar_prefetch = 0 : i64, scratch_operands = 0 : i64, tpu.core_type = #tpu.core_type<tc>, window_params = [{transform_indices = @transform_0, window_bounds = array<i64: 1, 8, 16>}, {pipeline_mode = #tpu.pipeline_mode<synchronous>, transform_indices = @transform_1, window_bounds = array<i64: 12, 384>}, {pipeline_mode = #tpu.pipeline_mode<synchronous>, transform_indices = @transform_2, window_bounds = array<i64: 8, 8>}, {pipeline_mode = #tpu.pipeline_mode<synchronous>, transform_indices = @transform_3, window_bounds = array<i64: 16, 32>}, {pipeline_mode = #tpu.pipeline_mode<synchronous>, transform_indices = @transform_4, window_bounds = array<i64: 32, 384>}, {pipeline_mode = #tpu.pipeline_mode<synchronous>, transform_indices = @transform_5, window_bounds = array<i64: 128, 32>}, {pipeline_mode = #tpu.pipeline_mode<synchronous>, transform_indices = @transform_6, window_bounds = array<i64: 32, 48>}, {pipeline_mode = #tpu.pipeline_mode<synchronous>, transform_indices = @transform_7, window_bounds = array<i64: 48, 384>}, {pipeline_mode = #tpu.pipeline_mode<synchronous>, transform_indices = @transform_8, window_bounds = array<i64: 128, 48>}, {pipeline_mode = #tpu.pipeline_mode<synchronous>, transform_indices = @transform_9, window_bounds = array<i64: 48, 32>}, {pipeline_mode = #tpu.pipeline_mode<synchronous>, transform_indices = @transform_10, window_bounds = array<i64: 32, 128>}, {transform_indices = @transform_11, window_bounds = array<i64: 1, 1, 128>}]} {
    %c0 = arith.constant 0 : index
    %c0_0 = arith.constant 0 : index
    %0 = vector.load %arg3[%c0, %c0_0] : memref<8x8xf32, #tpu.memory_space<vmem>>, vector<8x8xf32>
    %c0_1 = arith.constant 0 : index
    %c0_2 = arith.constant 0 : index
    %c0_3 = arith.constant 0 : index
    %1 = vector.load %arg1[%c0_1, %c0_2, %c0_3] : memref<1x8x16xbf16, #tpu.memory_space<vmem>>, vector<1x8x16xbf16>
    %2 = vector.shape_cast %1 : vector<1x8x16xbf16> to vector<8x16xbf16>
    %c0_4 = arith.constant 0 : index
    %c0_5 = arith.constant 0 : index
    %3 = vector.load %arg4[%c0_4, %c0_5] : memref<16x32xbf16, #tpu.memory_space<vmem>>, vector<16x32xbf16>
    %cst = arith.constant dense<0.000000e+00> : vector<8x32xf32>
    %4 = tpu.matmul %2, %3, %cst {dimension_numbers = #tpu.dot_dimension_numbers<[1], [0], [0], [1], [0, 0, 1, 1], [], []>} : vector<8x16xbf16>, vector<16x32xbf16>, vector<8x32xf32> -> vector<8x32xf32>
    %c0_6 = arith.constant 0 : index
    %c0_7 = arith.constant 0 : index
    %5 = vector.load %arg2[%c0_6, %c0_7] : memref<12x384xf32, #tpu.memory_space<vmem>>, vector<1x32xf32>
    %6 = vector.broadcast %5 : vector<1x32xf32> to vector<8x32xf32>
    %7 = arith.addf %4, %6 : vector<8x32xf32>
    %c0_8 = arith.constant 0 : index
    %c0_9 = arith.constant 0 : index
    %8 = vector.load %arg5[%c0_8, %c0_9] : memref<32x384xbf16, #tpu.memory_space<vmem>>, vector<32x384xbf16>
    %c0_10 = arith.constant 0 : index
    %c0_11 = arith.constant 0 : index
    %9 = vector.load %arg6[%c0_10, %c0_11] : memref<128x32xbf16, #tpu.memory_space<vmem>>, vector<128x32xbf16>
    %c1 = arith.constant 1 : index
    %c0_12 = arith.constant 0 : index
    %10 = vector.load %arg2[%c1, %c0_12] : memref<12x384xf32, #tpu.memory_space<vmem>>, vector<1x384xf32>
    %c2 = arith.constant 2 : index
    %c0_13 = arith.constant 0 : index
    %11 = vector.load %arg2[%c2, %c0_13] : memref<12x384xf32, #tpu.memory_space<vmem>>, vector<1x32xf32>
    %12 = arith.truncf %7 : vector<8x32xf32> to vector<8x32xbf16>
    %cst_14 = arith.constant dense<0.000000e+00> : vector<8x384xf32>
    %13 = tpu.matmul %12, %8, %cst_14 {dimension_numbers = #tpu.dot_dimension_numbers<[1], [0], [0], [1], [0, 0, 1, 1], [], []>} : vector<8x32xbf16>, vector<32x384xbf16>, vector<8x384xf32> -> vector<8x384xf32>
    %14 = vector.broadcast %10 : vector<1x384xf32> to vector<8x384xf32>
    %15 = arith.addf %13, %14 : vector<8x384xf32>
    %16 = vector.extract_strided_slice %15 {offsets = [0, 0], sizes = [8, 128], strides = [1, 1]} : vector<8x384xf32> to vector<8x128xf32>
    %17 = arith.truncf %16 : vector<8x128xf32> to vector<8x128xbf16>
    %18 = vector.extract_strided_slice %15 {offsets = [0, 128], sizes = [8, 128], strides = [1, 1]} : vector<8x384xf32> to vector<8x128xf32>
    %19 = arith.truncf %18 : vector<8x128xf32> to vector<8x128xbf16>
    %20 = vector.extract_strided_slice %15 {offsets = [0, 256], sizes = [8, 128], strides = [1, 1]} : vector<8x384xf32> to vector<8x128xf32>
    %21 = arith.truncf %20 : vector<8x128xf32> to vector<8x128xbf16>
    %cst_15 = arith.constant dense<0.000000e+00> : vector<8x8xf32>
    %22 = tpu.matmul %17, %19, %cst_15 {dimension_numbers = #tpu.dot_dimension_numbers<[1], [1], [0], [0], [0, 0, 1, 0], [], []>} : vector<8x128xbf16>, vector<8x128xbf16>, vector<8x8xf32> -> vector<8x8xf32>
    %23 = arith.addf %22, %0 : vector<8x8xf32>
    %cst_16 = arith.constant dense<0xFF800000> : vector<8xf32>
    %24 = vector.multi_reduction <maximumf>, %23, %cst_16 [1] : vector<8x8xf32> to vector<8xf32>
    %25 = vector.shape_cast %24 : vector<8xf32> to vector<8x1xf32>
    %26 = vector.broadcast %25 : vector<8x1xf32> to vector<8x8xf32>
    %27 = arith.subf %23, %26 : vector<8x8xf32>
    %28 = math.exp %27 : vector<8x8xf32>
    %cst_17 = arith.constant dense<0.000000e+00> : vector<8xf32>
    %29 = vector.multi_reduction <add>, %28, %cst_17 [1] : vector<8x8xf32> to vector<8xf32>
    %30 = vector.shape_cast %29 : vector<8xf32> to vector<8x1xf32>
    %31 = tpu.reciprocal %30 {approx = true} : vector<8x1xf32> -> vector<8x1xf32>
    %32 = vector.broadcast %31 : vector<8x1xf32> to vector<8x8xf32>
    %33 = arith.mulf %28, %32 : vector<8x8xf32>
    %34 = arith.truncf %33 : vector<8x8xf32> to vector<8x8xbf16>
    %cst_18 = arith.constant dense<0.000000e+00> : vector<8x128xf32>
    %35 = tpu.matmul %34, %21, %cst_18 {dimension_numbers = #tpu.dot_dimension_numbers<[1], [0], [0], [1], [0, 0, 1, 1], [], []>} : vector<8x8xbf16>, vector<8x128xbf16>, vector<8x128xf32> -> vector<8x128xf32>
    %36 = arith.truncf %35 : vector<8x128xf32> to vector<8x128xbf16>
    %cst_19 = arith.constant dense<0.000000e+00> : vector<8x32xf32>
    %37 = tpu.matmul %36, %9, %cst_19 {dimension_numbers = #tpu.dot_dimension_numbers<[1], [0], [0], [1], [0, 0, 1, 1], [], []>} : vector<8x128xbf16>, vector<128x32xbf16>, vector<8x32xf32> -> vector<8x32xf32>
    %38 = vector.broadcast %11 : vector<1x32xf32> to vector<8x32xf32>
    %39 = arith.addf %37, %38 : vector<8x32xf32>
    %40 = arith.addf %39, %7 : vector<8x32xf32>
    %c3 = arith.constant 3 : index
    %c0_20 = arith.constant 0 : index
    %41 = vector.load %arg2[%c3, %c0_20] : memref<12x384xf32, #tpu.memory_space<vmem>>, vector<1x32xf32>
    %42 = vector.broadcast %41 : vector<1x32xf32> to vector<8x32xf32>
    %43 = arith.mulf %40, %42 : vector<8x32xf32>
    %c4 = arith.constant 4 : index
    %c0_21 = arith.constant 0 : index
    %44 = vector.load %arg2[%c4, %c0_21] : memref<12x384xf32, #tpu.memory_space<vmem>>, vector<1x32xf32>
    %45 = vector.broadcast %44 : vector<1x32xf32> to vector<8x32xf32>
    %46 = arith.addf %43, %45 : vector<8x32xf32>
    %cst_22 = arith.constant 0.000000e+00 : f32
    %47 = vector.broadcast %cst_22 : f32 to vector<8x32xf32>
    %48 = arith.maximumf %46, %47 : vector<8x32xf32>
    %49 = arith.truncf %48 : vector<8x32xf32> to vector<8x32xbf16>
    %c0_23 = arith.constant 0 : index
    %c0_24 = arith.constant 0 : index
    %50 = vector.load %arg7[%c0_23, %c0_24] : memref<32x48xbf16, #tpu.memory_space<vmem>>, vector<32x48xbf16>
    %cst_25 = arith.constant dense<0.000000e+00> : vector<8x48xf32>
    %51 = tpu.matmul %49, %50, %cst_25 {dimension_numbers = #tpu.dot_dimension_numbers<[1], [0], [0], [1], [0, 0, 1, 1], [], []>} : vector<8x32xbf16>, vector<32x48xbf16>, vector<8x48xf32> -> vector<8x48xf32>
    %c5 = arith.constant 5 : index
    %c0_26 = arith.constant 0 : index
    %52 = vector.load %arg2[%c5, %c0_26] : memref<12x384xf32, #tpu.memory_space<vmem>>, vector<1x48xf32>
    %53 = vector.broadcast %52 : vector<1x48xf32> to vector<8x48xf32>
    %54 = arith.addf %51, %53 : vector<8x48xf32>
    %c0_27 = arith.constant 0 : index
    %c0_28 = arith.constant 0 : index
    %55 = vector.load %arg8[%c0_27, %c0_28] : memref<48x384xbf16, #tpu.memory_space<vmem>>, vector<48x384xbf16>
    %c0_29 = arith.constant 0 : index
    %c0_30 = arith.constant 0 : index
    %56 = vector.load %arg9[%c0_29, %c0_30] : memref<128x48xbf16, #tpu.memory_space<vmem>>, vector<128x48xbf16>
    %c6 = arith.constant 6 : index
    %c0_31 = arith.constant 0 : index
    %57 = vector.load %arg2[%c6, %c0_31] : memref<12x384xf32, #tpu.memory_space<vmem>>, vector<1x384xf32>
    %c7 = arith.constant 7 : index
    %c0_32 = arith.constant 0 : index
    %58 = vector.load %arg2[%c7, %c0_32] : memref<12x384xf32, #tpu.memory_space<vmem>>, vector<1x48xf32>
    %59 = arith.truncf %54 : vector<8x48xf32> to vector<8x48xbf16>
    %cst_33 = arith.constant dense<0.000000e+00> : vector<8x384xf32>
    %60 = tpu.matmul %59, %55, %cst_33 {dimension_numbers = #tpu.dot_dimension_numbers<[1], [0], [0], [1], [0, 0, 1, 1], [], []>} : vector<8x48xbf16>, vector<48x384xbf16>, vector<8x384xf32> -> vector<8x384xf32>
    %61 = vector.broadcast %57 : vector<1x384xf32> to vector<8x384xf32>
    %62 = arith.addf %60, %61 : vector<8x384xf32>
    %63 = vector.extract_strided_slice %62 {offsets = [0, 0], sizes = [8, 128], strides = [1, 1]} : vector<8x384xf32> to vector<8x128xf32>
    %64 = arith.truncf %63 : vector<8x128xf32> to vector<8x128xbf16>
    %65 = vector.extract_strided_slice %62 {offsets = [0, 128], sizes = [8, 128], strides = [1, 1]} : vector<8x384xf32> to vector<8x128xf32>
    %66 = arith.truncf %65 : vector<8x128xf32> to vector<8x128xbf16>
    %67 = vector.extract_strided_slice %62 {offsets = [0, 256], sizes = [8, 128], strides = [1, 1]} : vector<8x384xf32> to vector<8x128xf32>
    %68 = arith.truncf %67 : vector<8x128xf32> to vector<8x128xbf16>
    %cst_34 = arith.constant dense<0.000000e+00> : vector<8x8xf32>
    %69 = tpu.matmul %64, %66, %cst_34 {dimension_numbers = #tpu.dot_dimension_numbers<[1], [1], [0], [0], [0, 0, 1, 0], [], []>} : vector<8x128xbf16>, vector<8x128xbf16>, vector<8x8xf32> -> vector<8x8xf32>
    %70 = arith.addf %69, %0 : vector<8x8xf32>
    %cst_35 = arith.constant dense<0xFF800000> : vector<8xf32>
    %71 = vector.multi_reduction <maximumf>, %70, %cst_35 [1] : vector<8x8xf32> to vector<8xf32>
    %72 = vector.shape_cast %71 : vector<8xf32> to vector<8x1xf32>
    %73 = vector.broadcast %72 : vector<8x1xf32> to vector<8x8xf32>
    %74 = arith.subf %70, %73 : vector<8x8xf32>
    %75 = math.exp %74 : vector<8x8xf32>
    %cst_36 = arith.constant dense<0.000000e+00> : vector<8xf32>
    %76 = vector.multi_reduction <add>, %75, %cst_36 [1] : vector<8x8xf32> to vector<8xf32>
    %77 = vector.shape_cast %76 : vector<8xf32> to vector<8x1xf32>
    %78 = tpu.reciprocal %77 {approx = true} : vector<8x1xf32> -> vector<8x1xf32>
    %79 = vector.broadcast %78 : vector<8x1xf32> to vector<8x8xf32>
    %80 = arith.mulf %75, %79 : vector<8x8xf32>
    %81 = arith.truncf %80 : vector<8x8xf32> to vector<8x8xbf16>
    %cst_37 = arith.constant dense<0.000000e+00> : vector<8x128xf32>
    %82 = tpu.matmul %81, %68, %cst_37 {dimension_numbers = #tpu.dot_dimension_numbers<[1], [0], [0], [1], [0, 0, 1, 1], [], []>} : vector<8x8xbf16>, vector<8x128xbf16>, vector<8x128xf32> -> vector<8x128xf32>
    %83 = arith.truncf %82 : vector<8x128xf32> to vector<8x128xbf16>
    %cst_38 = arith.constant dense<0.000000e+00> : vector<8x48xf32>
    %84 = tpu.matmul %83, %56, %cst_38 {dimension_numbers = #tpu.dot_dimension_numbers<[1], [0], [0], [1], [0, 0, 1, 1], [], []>} : vector<8x128xbf16>, vector<128x48xbf16>, vector<8x48xf32> -> vector<8x48xf32>
    %85 = vector.broadcast %58 : vector<1x48xf32> to vector<8x48xf32>
    %86 = arith.addf %84, %85 : vector<8x48xf32>
    %87 = arith.addf %86, %54 : vector<8x48xf32>
    %c8 = arith.constant 8 : index
    %c0_39 = arith.constant 0 : index
    %88 = vector.load %arg2[%c8, %c0_39] : memref<12x384xf32, #tpu.memory_space<vmem>>, vector<1x48xf32>
    %89 = vector.broadcast %88 : vector<1x48xf32> to vector<8x48xf32>
    %90 = arith.mulf %87, %89 : vector<8x48xf32>
    %c9 = arith.constant 9 : index
    %c0_40 = arith.constant 0 : index
    %91 = vector.load %arg2[%c9, %c0_40] : memref<12x384xf32, #tpu.memory_space<vmem>>, vector<1x48xf32>
    %92 = vector.broadcast %91 : vector<1x48xf32> to vector<8x48xf32>
    %93 = arith.addf %90, %92 : vector<8x48xf32>
    %cst_41 = arith.constant 0.000000e+00 : f32
    %94 = vector.broadcast %cst_41 : f32 to vector<8x48xf32>
    %95 = arith.maximumf %93, %94 : vector<8x48xf32>
    %96 = arith.truncf %95 : vector<8x48xf32> to vector<8x48xbf16>
    %c0_42 = arith.constant 0 : index
    %c0_43 = arith.constant 0 : index
    %97 = vector.load %arg10[%c0_42, %c0_43] : memref<48x32xbf16, #tpu.memory_space<vmem>>, vector<48x32xbf16>
    %cst_44 = arith.constant dense<0.000000e+00> : vector<8x32xf32>
    %98 = tpu.matmul %96, %97, %cst_44 {dimension_numbers = #tpu.dot_dimension_numbers<[1], [0], [0], [1], [0, 0, 1, 1], [], []>} : vector<8x48xbf16>, vector<48x32xbf16>, vector<8x32xf32> -> vector<8x32xf32>
    %c10 = arith.constant 10 : index
    %c0_45 = arith.constant 0 : index
    %99 = vector.load %arg2[%c10, %c0_45] : memref<12x384xf32, #tpu.memory_space<vmem>>, vector<1x32xf32>
    %100 = vector.broadcast %99 : vector<1x32xf32> to vector<8x32xf32>
    %101 = arith.addf %98, %100 : vector<8x32xf32>
    %cst_46 = arith.constant 0.000000e+00 : f32
    %102 = vector.broadcast %cst_46 : f32 to vector<8x32xf32>
    %103 = arith.maximumf %101, %102 : vector<8x32xf32>
    %104 = arith.truncf %103 : vector<8x32xf32> to vector<8x32xbf16>
    %c0_47 = arith.constant 0 : index
    %c0_48 = arith.constant 0 : index
    %105 = vector.load %arg11[%c0_47, %c0_48] : memref<32x128xbf16, #tpu.memory_space<vmem>>, vector<32x128xbf16>
    %cst_49 = arith.constant dense<0.000000e+00> : vector<8x128xf32>
    %106 = tpu.matmul %104, %105, %cst_49 {dimension_numbers = #tpu.dot_dimension_numbers<[1], [0], [0], [1], [0, 0, 1, 1], [], []>} : vector<8x32xbf16>, vector<32x128xbf16>, vector<8x128xf32> -> vector<8x128xf32>
    %c11 = arith.constant 11 : index
    %c0_50 = arith.constant 0 : index
    %107 = vector.load %arg2[%c11, %c0_50] : memref<12x384xf32, #tpu.memory_space<vmem>>, vector<1x128xf32>
    %108 = vector.broadcast %107 : vector<1x128xf32> to vector<8x128xf32>
    %109 = arith.addf %106, %108 : vector<8x128xf32>
    %cst_51 = arith.constant dense<0xFF800000> : vector<8xf32>
    %110 = vector.multi_reduction <maximumf>, %109, %cst_51 [1] : vector<8x128xf32> to vector<8xf32>
    %111 = vector.shape_cast %110 : vector<8xf32> to vector<8x1xf32>
    %112 = vector.broadcast %111 : vector<8x1xf32> to vector<8x128xf32>
    %113 = arith.subf %109, %112 : vector<8x128xf32>
    %114 = math.exp %113 : vector<8x128xf32>
    %cst_52 = arith.constant dense<0.000000e+00> : vector<8xf32>
    %115 = vector.multi_reduction <add>, %114, %cst_52 [1] : vector<8x128xf32> to vector<8xf32>
    %116 = vector.shape_cast %115 : vector<8xf32> to vector<8x1xf32>
    %117 = vector.broadcast %116 : vector<8x1xf32> to vector<8x128xf32>
    %118 = arith.divf %114, %117 : vector<8x128xf32>
    %119 = vector.shape_cast %118 : vector<8x128xf32> to vector<1x8x128xf32>
    %cst_53 = arith.constant 0.000000e+00 : f32
    %120 = vector.broadcast %cst_53 : f32 to vector<1x1x128xf32>
    %c0_54 = arith.constant 0 : index
    %c0_55 = arith.constant 0 : index
    %c0_56 = arith.constant 0 : index
    %121 = vector.load %arg12[%c0_54, %c0_55, %c0_56] : memref<1x1x128xf32, #tpu.memory_space<vmem>>, vector<1x1x128xf32>
    tpu.vector_store %arg12[%c0_54, %c0_55, %c0_56], %120 {strides = array<i32>} : memref<1x1x128xf32, #tpu.memory_space<vmem>>, vector<1x1x128xf32>,
    %122 = vector.extract_strided_slice %119 {offsets = [0, 0, 0], sizes = [1, 1, 4], strides = [1, 1, 1]} : vector<1x8x128xf32> to vector<1x1x4xf32>
    %c0_57 = arith.constant 0 : index
    %c0_58 = arith.constant 0 : index
    %c0_59 = arith.constant 0 : index
    %123 = vector.load %arg12[%c0_57, %c0_58, %c0_59] : memref<1x1x128xf32, #tpu.memory_space<vmem>>, vector<1x1x4xf32>
    tpu.vector_store %arg12[%c0_57, %c0_58, %c0_59], %122 {strides = array<i32>} : memref<1x1x128xf32, #tpu.memory_space<vmem>>, vector<1x1x4xf32>,
    %124 = vector.extract_strided_slice %119 {offsets = [0, 1, 0], sizes = [1, 1, 4], strides = [1, 1, 1]} : vector<1x8x128xf32> to vector<1x1x4xf32>
    %c0_60 = arith.constant 0 : index
    %c0_61 = arith.constant 0 : index
    %c4_62 = arith.constant 4 : index
    %125 = vector.load %arg12[%c0_60, %c0_61, %c4_62] : memref<1x1x128xf32, #tpu.memory_space<vmem>>, vector<1x1x4xf32>
    tpu.vector_store %arg12[%c0_60, %c0_61, %c4_62], %124 {strides = array<i32>} : memref<1x1x128xf32, #tpu.memory_space<vmem>>, vector<1x1x4xf32>,
    %126 = vector.extract_strided_slice %119 {offsets = [0, 2, 0], sizes = [1, 1, 4], strides = [1, 1, 1]} : vector<1x8x128xf32> to vector<1x1x4xf32>
    %c0_63 = arith.constant 0 : index
    %c0_64 = arith.constant 0 : index
    %c8_65 = arith.constant 8 : index
    %127 = vector.load %arg12[%c0_63, %c0_64, %c8_65] : memref<1x1x128xf32, #tpu.memory_space<vmem>>, vector<1x1x4xf32>
    tpu.vector_store %arg12[%c0_63, %c0_64, %c8_65], %126 {strides = array<i32>} : memref<1x1x128xf32, #tpu.memory_space<vmem>>, vector<1x1x4xf32>,
    %128 = vector.extract_strided_slice %119 {offsets = [0, 3, 0], sizes = [1, 1, 4], strides = [1, 1, 1]} : vector<1x8x128xf32> to vector<1x1x4xf32>
    %c0_66 = arith.constant 0 : index
    %c0_67 = arith.constant 0 : index
    %c12 = arith.constant 12 : index
    %129 = vector.load %arg12[%c0_66, %c0_67, %c12] : memref<1x1x128xf32, #tpu.memory_space<vmem>>, vector<1x1x4xf32>
    tpu.vector_store %arg12[%c0_66, %c0_67, %c12], %128 {strides = array<i32>} : memref<1x1x128xf32, #tpu.memory_space<vmem>>, vector<1x1x4xf32>,
    %130 = vector.extract_strided_slice %119 {offsets = [0, 4, 0], sizes = [1, 1, 4], strides = [1, 1, 1]} : vector<1x8x128xf32> to vector<1x1x4xf32>
    %c0_68 = arith.constant 0 : index
    %c0_69 = arith.constant 0 : index
    %c16 = arith.constant 16 : index
    %131 = vector.load %arg12[%c0_68, %c0_69, %c16] : memref<1x1x128xf32, #tpu.memory_space<vmem>>, vector<1x1x4xf32>
    tpu.vector_store %arg12[%c0_68, %c0_69, %c16], %130 {strides = array<i32>} : memref<1x1x128xf32, #tpu.memory_space<vmem>>, vector<1x1x4xf32>,
    %132 = vector.extract_strided_slice %119 {offsets = [0, 5, 0], sizes = [1, 1, 4], strides = [1, 1, 1]} : vector<1x8x128xf32> to vector<1x1x4xf32>
    %c0_70 = arith.constant 0 : index
    %c0_71 = arith.constant 0 : index
    %c20 = arith.constant 20 : index
    %133 = vector.load %arg12[%c0_70, %c0_71, %c20] : memref<1x1x128xf32, #tpu.memory_space<vmem>>, vector<1x1x4xf32>
    tpu.vector_store %arg12[%c0_70, %c0_71, %c20], %132 {strides = array<i32>} : memref<1x1x128xf32, #tpu.memory_space<vmem>>, vector<1x1x4xf32>,
    %134 = vector.extract_strided_slice %119 {offsets = [0, 6, 0], sizes = [1, 1, 4], strides = [1, 1, 1]} : vector<1x8x128xf32> to vector<1x1x4xf32>
    %c0_72 = arith.constant 0 : index
    %c0_73 = arith.constant 0 : index
    %c24 = arith.constant 24 : index
    %135 = vector.load %arg12[%c0_72, %c0_73, %c24] : memref<1x1x128xf32, #tpu.memory_space<vmem>>, vector<1x1x4xf32>
    tpu.vector_store %arg12[%c0_72, %c0_73, %c24], %134 {strides = array<i32>} : memref<1x1x128xf32, #tpu.memory_space<vmem>>, vector<1x1x4xf32>,
    %136 = vector.extract_strided_slice %119 {offsets = [0, 7, 0], sizes = [1, 1, 4], strides = [1, 1, 1]} : vector<1x8x128xf32> to vector<1x1x4xf32>
    %c0_74 = arith.constant 0 : index
    %c0_75 = arith.constant 0 : index
    %c28 = arith.constant 28 : index
    %137 = vector.load %arg12[%c0_74, %c0_75, %c28] : memref<1x1x128xf32, #tpu.memory_space<vmem>>, vector<1x1x4xf32>
    tpu.vector_store %arg12[%c0_74, %c0_75, %c28], %136 {strides = array<i32>} : memref<1x1x128xf32, #tpu.memory_space<vmem>>, vector<1x1x4xf32>,
    return
  }
  func.func @transform_0(%arg0: i32) -> (i32, i32, i32) {
    %c0_i32 = arith.constant 0 : i32
    %c0_i32_0 = arith.constant 0 : i32
    %c0_i32_1 = arith.constant 0 : i32
    return %arg0, %c0_i32, %c0_i32_0 : i32, i32, i32
  }
  func.func @transform_1(%arg0: i32) -> (i32, i32) {
    %c0_i32 = arith.constant 0 : i32
    %c0_i32_0 = arith.constant 0 : i32
    %c0_i32_1 = arith.constant 0 : i32
    return %c0_i32, %c0_i32_0 : i32, i32
  }
  func.func @transform_2(%arg0: i32) -> (i32, i32) {
    %c0_i32 = arith.constant 0 : i32
    %c0_i32_0 = arith.constant 0 : i32
    %c0_i32_1 = arith.constant 0 : i32
    return %c0_i32, %c0_i32_0 : i32, i32
  }
  func.func @transform_3(%arg0: i32) -> (i32, i32) {
    %c0_i32 = arith.constant 0 : i32
    %c0_i32_0 = arith.constant 0 : i32
    %c0_i32_1 = arith.constant 0 : i32
    return %c0_i32, %c0_i32_0 : i32, i32
  }
  func.func @transform_4(%arg0: i32) -> (i32, i32) {
    %c0_i32 = arith.constant 0 : i32
    %c0_i32_0 = arith.constant 0 : i32
    %c0_i32_1 = arith.constant 0 : i32
    return %c0_i32, %c0_i32_0 : i32, i32
  }
  func.func @transform_5(%arg0: i32) -> (i32, i32) {
    %c0_i32 = arith.constant 0 : i32
    %c0_i32_0 = arith.constant 0 : i32
    %c0_i32_1 = arith.constant 0 : i32
    return %c0_i32, %c0_i32_0 : i32, i32
  }
  func.func @transform_6(%arg0: i32) -> (i32, i32) {
    %c0_i32 = arith.constant 0 : i32
    %c0_i32_0 = arith.constant 0 : i32
    %c0_i32_1 = arith.constant 0 : i32
    return %c0_i32, %c0_i32_0 : i32, i32
  }
  func.func @transform_7(%arg0: i32) -> (i32, i32) {
    %c0_i32 = arith.constant 0 : i32
    %c0_i32_0 = arith.constant 0 : i32
    %c0_i32_1 = arith.constant 0 : i32
    return %c0_i32, %c0_i32_0 : i32, i32
  }
  func.func @transform_8(%arg0: i32) -> (i32, i32) {
    %c0_i32 = arith.constant 0 : i32
    %c0_i32_0 = arith.constant 0 : i32
    %c0_i32_1 = arith.constant 0 : i32
    return %c0_i32, %c0_i32_0 : i32, i32
  }
  func.func @transform_9(%arg0: i32) -> (i32, i32) {
    %c0_i32 = arith.constant 0 : i32
    %c0_i32_0 = arith.constant 0 : i32
    %c0_i32_1 = arith.constant 0 : i32
    return %c0_i32, %c0_i32_0 : i32, i32
  }
  func.func @transform_10(%arg0: i32) -> (i32, i32) {
    %c0_i32 = arith.constant 0 : i32
    %c0_i32_0 = arith.constant 0 : i32
    %c0_i32_1 = arith.constant 0 : i32
    return %c0_i32, %c0_i32_0 : i32, i32
  }
  func.func @transform_11(%arg0: i32) -> (i32, i32, i32) {
    %c0_i32 = arith.constant 0 : i32
    %c0_i32_0 = arith.constant 0 : i32
    %c0_i32_1 = arith.constant 0 : i32
    return %arg0, %c0_i32, %c0_i32_0 : i32, i32, i32
  }
}

</mosaic_0001>

<bundles_post_ra>
// kernel: tpu_custom_call.1
= control target key start
LH: loop header
LB: loop body
LE: loop exit
PB: predicated region body
PF: predicated region fallthrough
CT: control target
= control target key end

     0   :  { %s2589_s0 = inlined_call_operand.hbm [shape: bf16[2,8,16], index: 0, kind: input, shape index: {}]   ;;  %s2590_s1 = inlined_call_operand.vmem [shape: f32[12,384], index: 1, kind: input, shape index: {}]   ;;  %s2591_s2 = inlined_call_operand.hbm [shape: f32[8,8], index: 2, kind: input, shape index: {}]   ;;  %s2592_s3 = inlined_call_operand.hbm [shape: bf16[16,32], index: 3, kind: input, shape index: {}]   ;;  %s2593_s4 = inlined_call_operand.vmem [shape: bf16[32,384], index: 4, kind: input, shape index: {}]   ;;  %s2594_s5 = inlined_call_operand.vmem [shape: bf16[128,32], index: 5, kind: input, shape index: {}]   ;;  %s2595_s6 = inlined_call_operand.vmem [shape: bf16[32,48], index: 6, kind: input, shape index: {}]   ;;  %s2596_s7 = inlined_call_operand.vmem [shape: bf16[48,384], index: 7, kind: input, shape index: {}]   ;;  %s2597_s8 = inlined_call_operand.vmem [shape: bf16[128,48], index: 8, kind: input, shape index: {}]   ;;  %s2598_s9 = inlined_call_operand.vmem [shape: bf16[48,32], index: 9, kind: input, shape index: {}]   ;;  %s2599_s10 = inlined_call_operand.vmem [shape: bf16[32,128], index: 10, kind: input, shape index: {}]   ;;  %s2600_s11 = inlined_call_operand.hbm [shape: f32[2,1,128], index: 11, kind: output, shape index: {}]  }
   0x1   :  { %2609 = sst [smem:[#allocation16_spill]] %s2591_s2 }
   0x2   :  { %2610 = sst [smem:[#allocation17_spill]] %s2592_s3 }
   0x3   :  { %16 = vsyncpa [#allocation3], 0 }
   0x4   :  { %18 = vsyncpa [#allocation3 + $0x1], 0 }
   0x5   :  { %19 = vsyncpa [#allocation6], 0 }
   0x6   :  { %20 = vsyncpa [#allocation4], 0 }
   0x7   :  { %22 = vsyncpa [#allocation4 + $0x1], 0  ;;  %s2143_s17 = smov 0   ;;  %s2145_s18 = smov 0  }
   0x8   :  { %s2147_s19 = smov 0   ;;  %s2149_s20 = smov 0  }
   0x9 LB: > { %2611 = sst [smem:[#allocation12_spill]] %s2061_s19  ;;  %s2164_s21 = sadd.s32 4294967295, %s2065_s20   ;;  %s2065_s20 = sphi %s2149_s20, %s2632_s20   ;;  %s2061_s19 = sphi %s2147_s19, %s2634_s19   ;;  %s2057_s18 = sphi %s2145_s18, %s2636_s18   ;;  %s2053_s17 = sphi %s2143_s17, %s2635_s17  }
   0xa   : > { %2612 = sst [smem:[#allocation13_spill]] %s2065_s20  ;;  %s1558_s22 = sadd.s32 4294967294, %s2065_s20  }
   0xb   : > { %p48_p0 = scmp.ne.s32.totalorder %s2057_s18, %s2053_s17  ;;  %p2601_p1 = scmp.eq.s32.totalorder %s2164_s21, 0 }
   0xc   : > { %p288_p3 = scmp.eq.s32.totalorder %s1558_s22, 1  ;;  %p1559_p5 = scmp.ge.s32.totalorder %s2065_s20, 1 }
   0xd   : > { %p2173_p4 = por %p2601_p1, %p48_p0  ;;  %p295_p7 = scmp.lt.s32.totalorder %s2065_s20, 3 }
   0xe   : > { %p2178_p6 = por %p288_p3, %p48_p0  ;;  %s2067_s26 = smov [#allocation5]  }
   0xf   : > { %s2613_s23 = scalar_select %p2173_p4, 1, 0 }
  0x10   : > { %s2614_s24 = scalar_select %p2178_p6, 1, 0 }
  0x11   : > { %p2183_p8 = pnand %p1559_p5, %p295_p7  ;;  %s311_s27 = sshll.u32 %s2067_s26, 4  ;;  %s312_s27 = int_to_ptr.vmem [resolvable:$true] %s311_s27 }
  0x12   : > { %s2068_s28 = smov [#allocation7]   ;;  %s1928_s12 = scalar_lea.vmem %s312_s27, 128 }
  0x13   : > { %s2615_s25 = scalar_select %p2183_p8, 1, 0 }
  0x14   : > { %p1794_p10 = pneg %p2183_p8  ;;  %s321_s29 = sshll.u32 %s2068_s28, 4  ;;  %s322_s29 = int_to_ptr.vmem [resolvable:$true] %s321_s29 }
  0x15   : > { %p1929_p13 = scmp.ne.s32.totalorder %s312_s27, %s1928_s12  ;;  %p1936_p5 = scmp.lt.s32.totalorder %s312_s27, %s312_s27 }
  0x16   : > { %p2192_p11 = pnand %p1794_p10, %p2601_p1  ;;  %p1937_p7 = scmp.lt.s32.totalorder %s1928_s12, %s1928_s12 }
  0x18   : > { %p1919_p12 = pneg %p2192_p11  ;;  %p1938_p9 = por %p1937_p7, %p1936_p5 }
  0x1a   : > { %p1931_p0 = pnand %p1929_p13, %p1919_p12 }
  0x1c   : > { %p1932_p3 = pneg %p1931_p0 }
  0x1e   : > { %p1939_p2 = pnand %p1938_p9, %p1932_p3 }
  0x20   : > { %1942 = shalt.err (!%p1939_p2)
}
  0x21   : > { %s2617_s2 = sld [smem:[#allocation16_spill]]  ;;  %s1954_s15 = scalar_lea.vmem %s322_s29, 128 }
  0x22   : > { %p1955_p10 = scmp.ne.s32.totalorder %s322_s29, %s1954_s15  ;;  %p1962_p13 = scmp.lt.s32.totalorder %s322_s29, %s322_s29 }
  0x23   : > { %p1963_p0 = scmp.lt.s32.totalorder %s1954_s15, %s1954_s15 }
  0x24   : > { %p1957_p1 = pnand %p1955_p10, %p1919_p12 }
  0x25   : > { %p1964_p4 = por %p1963_p0, %p1962_p13 }
  0x26   : > { %p1958_p6 = pneg %p1957_p1 }
  0x27   : > { %1797 = dma.hbm_to_vmem [thread:$0]  (!%p2192_p11), %s2617_s2, 128, %s312_s27, [#allocation6]  }
  0x28   : > { %p1965_p8 = pnand %p1964_p4, %p1958_p6 }
  0x2a   : > { %1968 = shalt.err (!%p1965_p8)
}
  0x2b   : > { %s2069_s16 = smov 64   ;;  %s2070_s22 = smov 4  }
  0x2c   : > { %s2618_s3 = sld [smem:[#allocation17_spill]]  ;;  %s2215_s28 = sadd.s32 1, %s2065_s20  }
  0x2d   : > { %2619 = sst [smem:[#allocation14_spill]] %s2215_s28  ;;  %s35_s12 = sadd.s32 1, %s2061_s19 }
  0x2e   : > { %s32_s13 = ssub.s32 %s2065_s20, %s2215_s28  ;;  %p42_p1 = scmp.ne.s32.totalorder %s2061_s19, %s2057_s18 }
  0x2f   : > { %p33_p2 = scmp.eq.s32.totalorder %s32_s13, 0  ;;  %p43_p4 = scmp.eq.s32.totalorder %s2065_s20, 0 }
  0x30   : > { %p2620_p6 = scmp.eq.s32.totalorder %s2164_s21, 1  ;;  %p1811_p9 = scmp.lt.s32.totalorder %s2065_s20, 2 }
  0x31   : > { %s2231_s15 = scalar_select %p33_p2, %s2061_s19, %s35_s12  }
  0x32   : > { %1800 = dma.hbm_to_vmem [thread:$0]  (!%p2192_p11), %s2618_s3, 128, %s322_s29, [#allocation6], %s2069_s16, %s2069_s16, %s2070_s22  }
  0x33   : > { %p2225_p8 = por %p2620_p6, %p42_p1  ;;  %2622 = sst [smem:[#allocation15_spill]] %s2231_s15 }
  0x34   : > { %p44_p12 = por %p43_p4, %p42_p1  ;;  %s356_s30 = sand.u32 1, %s2061_s19  }
  0x35   : > { %s2621_s14 = scalar_select %p2225_p8, 1, 0 }
  0x36   : > { %s1563_s26 = sshll.u32 %s356_s30, 2  ;;  %s1564_s29 = sshll.u32 %s2065_s20, 6 }
  0x37   : > { %s2238_s27 = scalar_lea.hbm %s2589_s0, %s1564_s29  ;;  %s360_s13 = scalar_lea.vmem [#allocation2], %s1563_s26 }
  0x38   : > { %s367_s2 = sshll.u32 %s360_s13, 4  ;;  %p2240_p11 = pnand %p1811_p9, %p44_p12  ;;  %s368_s2 = int_to_ptr.vmem [resolvable:$true] %s367_s2 }
  0x39   : > { %s357_s12 = scalar_lea.sflag [#allocation3], %s356_s30  ;;  %s1969_s15 = scalar_lea.hbm %s2238_s27, 64 }
  0x3a   : > { %p1970_p3 = scmp.ne.s32.totalorder %s2238_s27, %s1969_s15  ;;  %p1971_p5 = pneg %p2240_p11 }
  0x3b   : > { %s1974_s22 = scalar_lea.hbm %s2589_s0, 128  ;;  %p1975_p13 = scmp.lt.s32.totalorder %s2238_s27, %s2589_s0 }
  0x3c   : > { %p1972_p7 = pnand %p1971_p5, %p1970_p3  ;;  %p1976_p0 = scmp.lt.s32.totalorder %s1974_s22, %s1969_s15 }
  0x3e   : > { %p1973_p10 = pneg %p1972_p7  ;;  %p1977_p1 = por %p1976_p0, %p1975_p13 }
  0x40   : > { %p1978_p2 = pnand %p1977_p1, %p1973_p10 }
  0x42   : > { %1981 = shalt.err (!%p1978_p2)
}
  0x43   : > { %s1982_s13 = scalar_lea.vmem %s368_s2, 64  ;;  %s2071_s30 = smov [#allocation2]  }
  0x44   : > { %p1983_p4 = scmp.ne.s32.totalorder %s368_s2, %s1982_s13  ;;  %s1987_s28 = sshll.u32 %s2071_s30, 4  ;;  %s1988_s28 = int_to_ptr.vmem [resolvable:$false] %s1987_s28 }
  0x45   : > { %s1989_s20 = scalar_lea.vmem %s1988_s28, 128  ;;  %p1990_p12 = scmp.lt.s32.totalorder %s368_s2, %s1988_s28 }
  0x46   : > { %p1985_p6 = pnand %p1983_p4, %p1971_p5  ;;  %p1991_p3 = scmp.lt.s32.totalorder %s1989_s20, %s1982_s13 }
  0x48   : > { %p1986_p9 = pneg %p1985_p6  ;;  %p1992_p7 = por %p1991_p3, %p1990_p12 }
  0x4a   : > { %p1993_p8 = pnand %p1992_p7, %p1986_p9 }
  0x4c   : > { %1996 = shalt.err (!%p1993_p8)
}
  0x4d   : > { %1804 = dma.hbm_to_vmem [thread:$0]  (!%p2240_p11), %s2238_s27, 64, %s368_s2, %s357_s12  }
  0x4e   : > { %p2624_p10 = scmp.ne.s32.totalorder %s2615_s25, 0 }
  0x4f   : > { %s2261_s19 = sand.u32 (!%p2624_p10), 1, %s2057_s18   ;;  %p2625_p5 = scmp.ne.s32.totalorder (!%p2624_p10), %s2613_s23, 0 }
  0x50   : > { %376 = sbr.rel (%p2624_p10) target bundleno = 3563 (0xdeb), region = 64  ;;  %s1566_s15 = sshll.u32 (!%p2624_p10), %s2261_s19, 2 }
  0x51   : > { %s379_s29 = scalar_lea.sflag (!%p2624_p10), [#allocation3], %s2261_s19  ;;  %s382_s28 = scalar_lea.vmem (!%p2624_p10), [#allocation2], %s1566_s15 }
  0x55   : > { %2040 = dma.done.wait (%p2625_p5), %s379_s29, 64  }
  0x56   : > { %2042 = vsyncadd (%p2625_p5), %s379_s29, 4294967232  ;;  %p2626_p8 = scmp.eq.s32.totalorder %s2164_s21, 0 }
  0x58   : > { %2044 = dma.done.wait (%p2626_p8), [#allocation6], 256   ;;  %p2627_p11 = pmov %p2626_p8 }
  0x59   : > { %v2072_v0 = vmov 0.0   ;;  %vm2073_vm0 = vmmov 0   ;;  %v1861_v1 = vld [vmem:[#allocation7] sm:$0xff]   ;;  %v430_v2 = vld [vmem:[%s382_s28] sm:$0xf]  ;;  %vm440_vm1 = vcmask 130048   ;;  %v513_v17 = vlaneseq }
  0x5a   : > { %2046 = vsyncadd (%p2627_p11), [#allocation6], 4294967040  ;;  %1668 = vmatprep.subr.bf16.mxu0 %v2072_v0  ;;  %1670 = vmatprep.mubr.msk.bf16.mxu0 %vm2073_vm0, %v2072_v0  ;;  %v1862_v3 = vld [vmem:[%s2593_s4 + $0x1c] ss:$12 sps:$4 sm:$0xff]   ;;  %v1864_v4 = vld [vmem:[%s2593_s4 + $0x18] ss:$12 sps:$4 sm:$0xff]  }
  0x5b   : > { %1669 = vmatpush3.bf16.msra.mxu0 %v1861_v1  ;;  %v1865_v5 = vld [vmem:[%s2593_s4 + $0x20] ss:$12 sps:$4 sm:$0xff]   ;;  %576 = vmatprep.subr.bf16.mxu1 %v1862_v3  ;;  %v1866_v6 = vld [vmem:[%s2593_s4 + $0x4] ss:$12 sps:$4 sm:$0xff]   ;;  %v1869_v8 = vld [vmem:[%s2593_s4 + $0x8] ss:$12 sps:$4 sm:$0xff]  }
  0x5c   : > { %1674 = vmatprep.subr.bf16.mxu0 %v2072_v0  ;;  %577 = vmatpush1.bf16.msra.mxu1 %v1864_v4  ;;  %v1868_v7 = vld [vmem:[%s2593_s4] ss:$12 sps:$4 sm:$0xff]   ;;  %v2074_v9 = vmov 0   ;;  %vm560_vm2 = vcmask 261120   ;;  %v2314_v18 = vshrl.u32 %v513_v17, 7  ;;  %vm704_vm3 = vcmask 1043456  }
  0x5d   : > { %578 = vmatprep.subr.bf16.mxu1 %v1866_v6  ;;  %596 = vmatprep.mubr.bf16.mxu1 %v2074_v9  ;;  %v433_v10 = vld [vmem:[%s2590_s1] ss:$0 sm:$0xff]  ;;  %v1571_v20 = vld [vmem:[%s2590_s1 + $0x1] ss:$8 sm:$0x7]  ;;  %vm688_vm4 = vcmask 64512  }
  0x5e   : > { %1671 = vmatmul.mubr.msk.bf16.vlgmr.msra.gmra.mxu0 %vm440_vm1, %v430_v2  ;;  %v523_v19 = vsub.s32 2, %v2314_v18  ;;  %v519_v21 = vsub.s32 1, %v2314_v18  ;;  %v515_v24 = vsub.s32 0, %v2314_v18  ;;  %v2333_v41 = vld [vmem:[#allocation5] sm:$0xff]  ;;  %v1870_v53 = vld [vmem:[%s2594_s5 + $0x38] sm:$0xff]   ;;  %v1871_v54 = vld [vmem:[%s2594_s5 + $0x30] sm:$0xff]  }
  0x5f   : > { %1675 = vmatpush3.bf16.msra.mxu0 %v1865_v5  ;;  %1678 = vmatprep.mubr.msk.bf16.mxu0 %vm2073_vm0, %v2072_v0  ;;  %v1872_v55 = vld [vmem:[%s2594_s5 + $0x28] sm:$0xff]   ;;  %v1873_v56 = vld [vmem:[%s2594_s5 + $0x20] sm:$0xff]   ;;  %v1874_v57 = vld [vmem:[%s2594_s5 + $0x18] sm:$0xff]   ;;  %vm1000_vm5 = vcmask 392192   ;;  %s2529_s13 = scalar_lea.vmem [#allocation8], %s2261_s19  ;;  %vm1422_vm6 = vcmask 24576  }
  0x60   : > { %1676 = vmatprep.subr.bf16.mxu0 %v2072_v0  ;;  %579 = vmatpush1.bf16.msra.mxu1 %v1868_v7  ;;  %v524_v22 = vrot.slane %v1571_v20, %v523_v19  ;;  %v520_v23 = vrot.slane %v1571_v20, %v519_v21  ;;  %v516_v32 = vrot.slane %v1571_v20, %v515_v24  ;;  %v1875_v58 = vld [vmem:[%s2594_s5 + $0x10] sm:$0xff]   ;;  %v1876_v59 = vld [vmem:[%s2594_s5 + $0x8] sm:$0xff]   ;;  %v1877_v1 = vld [vmem:[%s2594_s5] sm:$0xff]   ;;  %s2075_s30 = smov 8   ;;  %s2076_s15 = smov 4   ;;  %vm1428_vm7 = vcmask 58401  }
  0x61   : > { %1682 = vmatprep.subr.bf16.mxu1 %v2072_v0  ;;  %v1878_v7 = vld [vmem:[%s2595_s6 + $0x8] sm:$0xff]   ;;  %v840_v20 = vld [vmem:[%s2590_s1 + $0x4] ss:$0 sm:$0xff]  ;;  %1421 = vst [vmem:[%s2529_s13] sm:$0x1] %v2072_v0  ;;  %s2077_s29 = smov 12   ;;  %s2078_s28 = smov 20  }
  0x62   : > { %s2079_s2 = smov 16   ;;  %s2080_s3 = smov 28   ;;  %vm1433_vm8 = vcmask 92226   ;;  %vm1438_vm9 = vcmask 126051   ;;  %vm1443_vm10 = vcmask 159876   ;;  %vm1448_vm11 = vcmask 193701  }
  0x63   : > { %1677 = vmatpush3.bf16.msra.mxu0 %v1869_v8  ;;  %v1879_v8 = vld [vmem:[%s2595_s6] sm:$0xff]   ;;  %s2081_s20 = smov 24   ;;  %s1620_s23 = sshll.u32 %s2164_s21, 4  ;;  %vm1453_vm12 = vcmask 227526   ;;  %vm1458_vm13 = vcmask 261351  }
  0x64   : > { %1688 = vmatprep.subr.bf16.mxu0 %v2072_v0  ;;  %s1473_s25 = sshll.u32 %s2529_s13, 4  ;;  %s2544_s16 = scalar_lea.hbm %s2600_s11, %s1620_s23  ;;  %s2546_s25 = int_to_ptr.vmem [resolvable:$true] %s1473_s25 }
  0x65   : > { %s1461_s22 = scalar_lea.sflag [#allocation4], %s2261_s19  ;;  %s1997_s21 = scalar_lea.vmem %s2546_s25, 16 }
  0x66   : > { %p1998_p13 = scmp.ne.s32.totalorder %s2546_s25, %s1997_s21  ;;  %p2628_p0 = scmp.ne.s32.totalorder %s2621_s14, 0 }
  0x67   : > { %s2082_s26 = smov [#allocation8]  }
  0x68   : > { %p1999_p1 = pnand %p1998_p13, %p2628_p0 }
  0x6a   : > { %p2000_p2 = pneg %p1999_p1 }
 0x11e   : > { %v478_v11 = vpop.f32.mrf.mxu0 }
 0x11f   : > { %v2304_v12 = vadd.f32 %v478_v11, %v433_v10  ;;  %v1882_v10 = vld [vmem:[%s2596_s7 + $0x34] ss:$12 sps:$4 sm:$0xff]  }
 0x120   : > { %v1672_v13 = vpop.f32.mrf.mxu0  ;;  %v510_v11 = vld [vmem:[%s2590_s1 + $0x2] ss:$0 sm:$0xff] }
 0x121   : > { %v511_v14 = vpack.c.bf16 %v2304_v12, %v2304_v12 }
 0x122   : > { %v481_v15 = vpop.f32.mrf.mxu0 }
 0x123   : > { %1578 = vmatmul.mubr.msk.bf16.vlgmr.msra.gmra.mxu1 %vm560_vm2, %v511_v14  ;;  %1679 = vmatmul.mubr.msk.bf16.vlgmr.msra.gmra.mxu0 %vm560_vm2, %v511_v14  ;;  %v838_v15 = vld [vmem:[%s2590_s1 + $0x3] ss:$0 sm:$0xff] }
 0x124   : > { %v1673_v16 = vpop.f32.mrf.mxu0  ;;  %1684 = vmatprep.mubr.msk.bf16.mxu1 %vm2073_vm0, %v2072_v0  ;;  %1690 = vmatprep.mubr.msk.bf16.mxu0 %vm2073_vm0, %v2072_v0 }
 0x1e3   : > { %v598_v25 = vpop.f32.mrf.mxu1  ;;  %v639_v26 = vpop.f32.mrf.mxu0 }
 0x1e4   : > { %v640_v27 = vadd.f32 %v639_v26, %v524_v22  ;;  %v599_v39 = vadd.f32 %v598_v25, %v516_v32  ;;  %v1886_v32 = vld [vmem:[%s2596_s7] ss:$12 sps:$4 sm:$0xff]  }
 0x1e5   : > { %v600_v28 = vpop.f32.mrf.mxu1  ;;  %v1680_v29 = vpop.f32.mrf.mxu0 }
 0x1e6   : > { %v647_v30 = vpack.c.bf16 %v640_v27, %v640_v27  ;;  %v601_v31 = vadd.f32 %v600_v28, %v520_v23  ;;  %v645_v40 = vpack.c.bf16 %v599_v39, %v599_v39  ;;  %v1880_v28 = vld [vmem:[%s2596_s7 + $0x30] ss:$12 sps:$4 sm:$0xff]  }
 0x1e7   : > { %v602_v33 = vpop.f32.mrf.mxu1  ;;  %v642_v34 = vpop.f32.mrf.mxu0 }
 0x1e8   : > { %v706_v35 = vsel %vm704_vm3, %v647_v30, 0  ;;  %v646_v36 = vpack.c.bf16 %v601_v31, %v601_v31  ;;  %v1885_v30 = vld [vmem:[%s2596_s7 + $0x1c] ss:$12 sps:$4 sm:$0xff]   ;;  %v1888_v31 = vld [vmem:[%s2596_s7 + $0x4] ss:$12 sps:$4 sm:$0xff]  }
 0x1e9   : > { %v603_v37 = vpop.f32.mrf.mxu1  ;;  %v1681_v38 = vpop.f32.mrf.mxu0  ;;  %1689 = vmatpush3.bf16.msra.mxu0 %v706_v35  ;;  %v848_v33 = vld [vmem:[%s2590_s1 + $0x5] ss:$0 sm:$0xff] }
 0x1ea   : > { %1683 = vmatpush3.bf16.xpose.msra.mxu1 %v646_v36  ;;  %1714 = vmatprep.subr.bf16.mxu0 %v2072_v0  ;;  %v1889_v36 = vld [vmem:[%s2596_s7 + $0x38] ss:$12 sps:$4 sm:$0xff]  }
 0x1eb   : > { %1694 = vmatprep.subr.bf16.mxu1 %v2072_v0 }
 0x1f1   : > { %1685 = vmatmul.mubr.bf16.vlgmr.msra.gmra.mxu1 %v645_v40  ;;  %v1890_v40 = vld [vmem:[%s2596_s7 + $0x20] ss:$12 sps:$4 sm:$0xff]  }
 0x1f2   : > { %1710 = vmatprep.mubr.msk.bf16.mxu1 %vm2073_vm0, %v2072_v0  ;;  %1695 = vmatpush3.bf16.msra.mxu1 %v1870_v53 }
 0x1f3   : > { %1696 = vmatprep.subr.bf16.mxu1 %v2072_v0 }
 0x1f6   : > { %1697 = vmatpush3.bf16.msra.mxu1 %v1871_v54 }
 0x1f7   : > { %1698 = vmatprep.subr.bf16.mxu1 %v2072_v0 }
 0x1fa   : > { %1699 = vmatpush3.bf16.msra.mxu1 %v1872_v55 }
 0x1fb   : > { %1700 = vmatprep.subr.bf16.mxu1 %v2072_v0 }
 0x1fe   : > { %1701 = vmatpush3.bf16.msra.mxu1 %v1873_v56 }
 0x1ff   : > { %1702 = vmatprep.subr.bf16.mxu1 %v2072_v0 }
 0x202   : > { %1703 = vmatpush3.bf16.msra.mxu1 %v1874_v57 }
 0x203   : > { %1704 = vmatprep.subr.bf16.mxu1 %v2072_v0 }
 0x206   : > { %1705 = vmatpush3.bf16.msra.mxu1 %v1875_v58 }
 0x207   : > { %1706 = vmatprep.subr.bf16.mxu1 %v2072_v0 }
 0x20a   : > { %1707 = vmatpush3.bf16.msra.mxu1 %v1876_v59 }
 0x20b   : > { %1708 = vmatprep.subr.bf16.mxu1 %v2072_v0 }
 0x20e   : > { %1709 = vmatpush3.bf16.msra.mxu1 %v1877_v1 }
 0x20f   : > { %1732 = vmatprep.subr.bf16.mxu1 %v2072_v0 }
 0x2b1   : > { %v682_v42 = vpop.f32.mrf.mxu1 }
 0x2b2   : > { %v683_v43 = vadd.f32 %v682_v42, %v2333_v41  ;;  %v1891_v42 = vld [vmem:[%s2596_s7 + $0x8] ss:$12 sps:$4 sm:$0xff]  }
 0x2b3   : > { %v1686_v44 = vpop.f32.mrf.mxu1 }
 0x2b4   : > { %v689_v45 = vsel %vm688_vm4, %v683_v43, -inf }
 0x2b5   : > { %v685_v46 = vpop.f32.mrf.mxu1  ;;  %690 = vmax.xlane.f32.xlu0 %v689_v45 }
 0x2b7   : > { %v1687_v47 = vpop.f32.mrf.mxu1 }
 0x33e   : > { %v691_v48 = vpop.xlane.xlu0 %690 }
 0x33f   : > { %v692_v49 = vsub.f32 %v683_v43, %v691_v48  ;;  %v1592_v43 = vld [vmem:[%s2590_s1 + $0x6] ss:$8 sm:$0x7] }
 0x340   : > { %v944_v44 = vrot.slane %v1592_v43, %v519_v21  ;;  %v940_v48 = vrot.slane %v1592_v43, %v515_v24  ;;  %v948_v53 = vrot.slane %v1592_v43, %v523_v19 }
 0x341   : > { %v693_v50 = vmul.f32 1.442695, %v692_v49 }
 0x343   : > { %1905 = vpow2.f32 %v693_v50 }
 0x350   : > { %v1906_v51 = vpop.eup %1905 }
 0x351   : > { %v695_v52 = vsel %vm688_vm4, %v1906_v51, 0.0 }
 0x352   : > { %696 = vadd.xlane.f32.xlu0 %v695_v52 }
 0x3db   : > { %v697_v60 = vpop.xlane.xlu0 %696 }
 0x3dc   : > { %1907 = vrcp.f32 %v697_v60 }
 0x3e9   : > { %v1908_v61 = vpop.eup %1907 }
 0x3ea   : > { %v699_v62 = vmul.f32 %v1908_v61, %v1906_v51 }
 0x3ec   : > { %v700_v63 = vpack.c.bf16 %v699_v62, %v699_v62 }
 0x3ee   : > { %1691 = vmatmul.mubr.msk.bf16.vlgmr.msra.gmra.mxu0 %vm688_vm4, %v700_v63 }
 0x3ef   : > { %1718 = vmatprep.mubr.msk.bf16.mxu0 %vm2073_vm0, %v2072_v0  ;;  %1715 = vmatpush3.bf16.msra.mxu0 %v1878_v7  ;;  %v1894_v7 = vld [vmem:[%s2597_s8 + $0x28] sm:$0xff]  }
 0x3f0   : > { %1716 = vmatprep.subr.bf16.mxu0 %v2072_v0 }
 0x3f3   : > { %1717 = vmatpush3.bf16.msra.mxu0 %v1879_v8  ;;  %v1895_v8 = vld [vmem:[%s2597_s8 + $0x20] sm:$0xff]  }
 0x3f4   : > { %1014 = vmatprep.subr.bf16.mxu0 %v1882_v10  ;;  %v1896_v10 = vld [vmem:[%s2597_s8 + $0x18] sm:$0xff]  }
 0x4ae   : > { %v742_v2 = vpop.f32.mrf.mxu0 }
 0x4af   : > { %v748_v3 = vpack.c.bf16 %v742_v2, %v742_v2 }
 0x4b0   : > { %v1692_v4 = vpop.f32.mrf.mxu0 }
 0x4b1   : > { %1711 = vmatmul.mubr.bf16.vlgmr.msra.gmra.mxu1 %v748_v3 }
 0x4b2   : > { %v745_v5 = vpop.f32.mrf.mxu0  ;;  %1734 = vmatprep.mubr.msk.bf16.mxu1 %vm2073_vm0, %v2072_v0 }
 0x4b4   : > { %v1693_v6 = vpop.f32.mrf.mxu0 }
 0x4b5   : > { %v1892_v6 = vld [vmem:[%s2597_s8 + $0x38] sm:$0xff]  }
 0x571   : > { %v831_v13 = vpop.f32.mrf.mxu1 }
 0x572   : > { %v832_v14 = vadd.f32 %v831_v13, %v510_v11  ;;  %v1897_v11 = vld [vmem:[%s2597_s8 + $0x10] sm:$0xff]   ;;  %v1898_v13 = vld [vmem:[%s2597_s8 + $0x8] sm:$0xff]  }
 0x573   : > { %v1712_v16 = vpop.f32.mrf.mxu1 }
 0x574   : > { %v837_v17 = vadd.f32 %v832_v14, %v2304_v12  ;;  %v1883_v12 = vld [vmem:[%s2596_s7 + $0x18] ss:$12 sps:$4 sm:$0xff]  }
 0x575   : > { %v834_v22 = vpop.f32.mrf.mxu1 }
 0x576   : > { %v839_v23 = vmul.f32 %v838_v15, %v837_v17 }
 0x577   : > { %v1713_v25 = vpop.f32.mrf.mxu1 }
 0x578   : > { %v841_v26 = vadd.f32 %v840_v20, %v839_v23  ;;  %v1899_v20 = vld [vmem:[%s2597_s8] sm:$0xff]  }
 0x57a   : > { %v842_v27 = vmax.f32 %v841_v26, 0.0 }
 0x57c   : > { %v843_v29 = vpack.c.bf16 %v842_v27, %v842_v27 }
 0x57e   : > { %1719 = vmatmul.mubr.msk.bf16.vlgmr.msra.gmra.mxu0 %vm560_vm2, %v843_v29  ;;  %v1901_v29 = vld [vmem:[%s2598_s9 + $0x8] sm:$0xff]  }
 0x57f   : > { %1015 = vmatpush1.bf16.msra.mxu0 %v1880_v28  ;;  %1036 = vmatprep.mubr.bf16.mxu0 %v2074_v9  ;;  %v1900_v28 = vld [vmem:[%s2598_s9 + $0x10] sm:$0xff]  }
 0x580   : > { %1016 = vmatprep.subr.bf16.mxu0 %v1885_v30  ;;  %v1902_v30 = vld [vmem:[%s2598_s9] sm:$0xff]  }
 0x583   : > { %1017 = vmatpush1.bf16.msra.mxu0 %v1883_v12  ;;  %v934_v12 = vld [vmem:[%s2590_s1 + $0x7] ss:$0 sm:$0xff] }
 0x584   : > { %1018 = vmatprep.subr.bf16.mxu0 %v1888_v31 }
 0x587   : > { %1019 = vmatpush1.bf16.msra.mxu0 %v1886_v32 }
 0x588   : > { %1722 = vmatprep.subr.bf16.mxu0 %v2072_v0 }
 0x63e   : > { %v898_v34 = vpop.f32.mrf.mxu0 }
 0x63f   : > { %v2416_v9 = vadd.f32 %v898_v34, %v848_v33  ;;  %v1276_v33 = vld [vmem:[%s2590_s1 + $0x18] ss:$0 sm:$0xff] }
 0x640   : > { %v1720_v35 = vpop.f32.mrf.mxu0 }
 0x641   : > { %v935_v37 = vpack.c.bf16 %v2416_v9, %v2416_v9 }
 0x642   : > { %v901_v38 = vpop.f32.mrf.mxu0 }
 0x643   : > { %1602 = vmatmul.mubr.msk.bf16.vlgmr.msra.gmra.mxu0 %vm1000_vm5, %v935_v37 }
 0x644   : > { %1723 = vmatpush3.bf16.msra.mxu0 %v1889_v36  ;;  %v1721_v39 = vpop.f32.mrf.mxu0  ;;  %1728 = vmatprep.mubr.msk.bf16.mxu0 %vm2073_vm0, %v2072_v0  ;;  %v1278_v36 = vld [vmem:[%s2590_s1 + $0x19] ss:$0 sm:$0xff] }
 0x645   : > { %1724 = vmatprep.subr.bf16.mxu0 %v2072_v0 }
 0x648   : > { %1725 = vmatpush3.bf16.msra.mxu0 %v1890_v40 }
 0x649   : > { %1726 = vmatprep.subr.bf16.mxu0 %v2072_v0 }
 0x64c   : > { %1727 = vmatpush3.bf16.msra.mxu0 %v1891_v42 }
 0x64d   : > { %1738 = vmatprep.subr.bf16.mxu0 %v2072_v0 }
 0x64f   : > { %1729 = vmatmul.mubr.msk.bf16.vlgmr.msra.gmra.mxu0 %vm1000_vm5, %v935_v37 }
 0x650   : > { %1740 = vmatprep.mubr.msk.bf16.mxu0 %vm2073_vm0, %v2072_v0 }
 0x703   : > { %v1038_v45 = vpop.f32.mrf.mxu0 }
 0x704   : > { %v1039_v52 = vadd.f32 %v1038_v45, %v940_v48  ;;  %v1288_v45 = vld [vmem:[%s2590_s1 + $0x1a] ss:$0 sm:$0xff] }
 0x705   : > { %v1040_v46 = vpop.f32.mrf.mxu0 }
 0x706   : > { %v1041_v47 = vadd.f32 %v1040_v46, %v944_v44  ;;  %v1085_v54 = vpack.c.bf16 %v1039_v52, %v1039_v52  ;;  %v1903_v44 = vld [vmem:[%s2599_s10 + $0x8] sm:$0xff]  }
 0x707   : > { %v1042_v49 = vpop.f32.mrf.mxu0 }
 0x708   : > { %v1086_v50 = vpack.c.bf16 %v1041_v47, %v1041_v47 }
 0x709   : > { %v1043_v51 = vpop.f32.mrf.mxu0 }
 0x70a   : > { %1733 = vmatpush3.bf16.xpose.msra.mxu1 %v1086_v50 }
 0x70b   : > { %1744 = vmatprep.subr.bf16.mxu1 %v2072_v0 }
 0x70f   : > { %v1079_v55 = vpop.f32.mrf.mxu0 }
 0x710   : > { %v1080_v56 = vadd.f32 %v1079_v55, %v948_v53  ;;  %v1356_v53 = vld [vmem:[%s2590_s1 + $0x1b] ss:$0 sm:$0xff] }
 0x711   : > { %v1730_v21 = vpop.f32.mrf.mxu0  ;;  %1735 = vmatmul.mubr.bf16.vlgmr.msra.gmra.mxu1 %v1085_v54 }
 0x712   : > { %v1087_v57 = vpack.c.bf16 %v1080_v56, %v1080_v56  ;;  %1760 = vmatprep.mubr.msk.bf16.mxu1 %vm2073_vm0, %v2072_v0  ;;  %1745 = vmatpush3.bf16.msra.mxu1 %v1892_v6 }
 0x713   : > { %v1082_v24 = vpop.f32.mrf.mxu0  ;;  %1746 = vmatprep.subr.bf16.mxu1 %v2072_v0 }
 0x714   : > { %v1144_v58 = vsel %vm704_vm3, %v1087_v57, 0 }
 0x715   : > { %v1731_v59 = vpop.f32.mrf.mxu0  ;;  %1739 = vmatpush3.bf16.msra.mxu0 %v1144_v58 }
 0x716   : > { %1764 = vmatprep.subr.bf16.mxu0 %v2072_v0 }
 0x7d1   : > { %v1122_v60 = vpop.f32.mrf.mxu1 }
 0x7d2   : > { %v1123_v18 = vadd.f32 %v1122_v60, %v2333_v41  ;;  %v1893_v41 = vld [vmem:[%s2597_s8 + $0x30] sm:$0xff]  }
 0x7d3   : > { %v1736_v19 = vpop.f32.mrf.mxu1  ;;  %1747 = vmatpush3.bf16.msra.mxu1 %v1893_v41 }
 0x7d4   : > { %v1128_v61 = vsel %vm688_vm4, %v1123_v18, -inf  ;;  %1748 = vmatprep.subr.bf16.mxu1 %v2072_v0 }
 0x7d5   : > { %1129 = vmax.xlane.f32.xlu1 %v1128_v61  ;;  %v1125_v62 = vpop.f32.mrf.mxu1 }
 0x7d7   : > { %v1737_v63 = vpop.f32.mrf.mxu1  ;;  %1749 = vmatpush3.bf16.msra.mxu1 %v1894_v7 }
 0x7d8   : > { %1750 = vmatprep.subr.bf16.mxu1 %v2072_v0 }
 0x7db   : > { %1751 = vmatpush3.bf16.msra.mxu1 %v1895_v8 }
 0x7dc   : > { %1752 = vmatprep.subr.bf16.mxu1 %v2072_v0 }
 0x7df   : > { %1753 = vmatpush3.bf16.msra.mxu1 %v1896_v10 }
 0x7e0   : > { %1754 = vmatprep.subr.bf16.mxu1 %v2072_v0 }
 0x7e3   : > { %1755 = vmatpush3.bf16.msra.mxu1 %v1897_v11 }
 0x7e4   : > { %1756 = vmatprep.subr.bf16.mxu1 %v2072_v0 }
 0x7e7   : > { %1757 = vmatpush3.bf16.msra.mxu1 %v1898_v13 }
 0x7e8   : > { %1758 = vmatprep.subr.bf16.mxu1 %v2072_v0 }
 0x7eb   : > { %1759 = vmatpush3.bf16.msra.mxu1 %v1899_v20 }
 0x85e   : > { %v1130_v1 = vpop.xlane.xlu1 %1129 }
 0x85f   : > { %v1131_v2 = vsub.f32 %v1123_v18, %v1130_v1 }
 0x861   : > { %v1132_v3 = vmul.f32 1.442695, %v1131_v2 }
 0x863   : > { %1909 = vpow2.f32 %v1132_v3 }
 0x870   : > { %v1910_v4 = vpop.eup %1909 }
 0x871   : > { %v1134_v5 = vsel %vm688_vm4, %v1910_v4, 0.0 }
 0x872   : > { %1135 = vadd.xlane.f32.xlu1 %v1134_v5 }
 0x8fb   : > { %v1136_v14 = vpop.xlane.xlu1 %1135 }
 0x8fc   : > { %1911 = vrcp.f32 %v1136_v14 }
 0x909   : > { %v1912_v15 = vpop.eup %1911 }
 0x90a   : > { %v1138_v16 = vmul.f32 %v1912_v15, %v1910_v4 }
 0x90c   : > { %v1139_v17 = vpack.c.bf16 %v1138_v16, %v1138_v16 }
 0x90e   : > { %1741 = vmatmul.mubr.msk.bf16.vlgmr.msra.gmra.mxu0 %vm688_vm4, %v1139_v17 }
 0x90f   : > { %1770 = vmatprep.mubr.msk.bf16.mxu0 %vm2073_vm0, %v2072_v0  ;;  %1765 = vmatpush3.bf16.msra.mxu0 %v1900_v28 }
 0x910   : > { %1766 = vmatprep.subr.bf16.mxu0 %v2072_v0 }
 0x913   : > { %1767 = vmatpush3.bf16.msra.mxu0 %v1901_v29 }
 0x914   : > { %1768 = vmatprep.subr.bf16.mxu0 %v2072_v0 }
 0x917   : > { %1769 = vmatpush3.bf16.msra.mxu0 %v1902_v30 }
 0x918   : > { %1774 = vmatprep.subr.bf16.mxu0 %v2072_v0 }
 0x9ce   : > { %v1180_v22 = vpop.f32.mrf.mxu0 }
 0x9cf   : > { %v1186_v23 = vpack.c.bf16 %v1180_v22, %v1180_v22 }
 0x9d0   : > { %v1742_v25 = vpop.f32.mrf.mxu0 }
 0x9d1   : > { %1761 = vmatmul.mubr.bf16.vlgmr.msra.gmra.mxu1 %v1186_v23 }
 0x9d2   : > { %v1183_v26 = vpop.f32.mrf.mxu0 }
 0x9d4   : > { %v1743_v27 = vpop.f32.mrf.mxu0 }
 0xa91   : > { %v1269_v31 = vpop.f32.mrf.mxu1 }
 0xa92   : > { %v1270_v32 = vadd.f32 %v1269_v31, %v934_v12 }
 0xa93   : > { %v1762_v34 = vpop.f32.mrf.mxu1 }
 0xa94   : > { %v1275_v35 = vadd.f32 %v1270_v32, %v2416_v9  ;;  %v1904_v9 = vld [vmem:[%s2599_s10] sm:$0xff]  }
 0xa95   : > { %v1272_v37 = vpop.f32.mrf.mxu1 }
 0xa96   : > { %v1277_v38 = vmul.f32 %v1276_v33, %v1275_v35 }
 0xa97   : > { %v1763_v39 = vpop.f32.mrf.mxu1 }
 0xa98   : > { %v1279_v40 = vadd.f32 %v1278_v36, %v1277_v38 }
 0xa9a   : > { %v1280_v42 = vmax.f32 %v1279_v40, 0.0 }
 0xa9c   : > { %v1281_v43 = vpack.c.bf16 %v1280_v42, %v1280_v42 }
 0xa9e   : > { %1771 = vmatmul.mubr.msk.bf16.vlgmr.msra.gmra.mxu0 %vm1000_vm5, %v1281_v43 }
 0xa9f   : > { %1778 = vmatprep.mubr.msk.bf16.mxu0 %vm2073_vm0, %v2072_v0  ;;  %1775 = vmatpush3.bf16.msra.mxu0 %v1903_v44 }
 0xaa0   : > { %1776 = vmatprep.subr.bf16.mxu0 %v2072_v0 }
 0xaa3   : > { %1777 = vmatpush3.bf16.msra.mxu0 %v1904_v9 }
 0xb5e   : > { %v1344_v46 = vpop.f32.mrf.mxu0 }
 0xb5f   : > { %v1345_v47 = vadd.f32 %v1344_v46, %v1288_v45 }
 0xb60   : > { %v1772_v48 = vpop.f32.mrf.mxu0 }
 0xb61   : > { %v1350_v49 = vmax.f32 %v1345_v47, 0.0 }
 0xb62   : > { %v1347_v50 = vpop.f32.mrf.mxu0 }
 0xb63   : > { %v1351_v51 = vpack.c.bf16 %v1350_v49, %v1350_v49 }
 0xb64   : > { %v1773_v52 = vpop.f32.mrf.mxu0 }
 0xb65   : > { %1779 = vmatmul.mubr.msk.bf16.vlgmr.msra.gmra.mxu0 %vm560_vm2, %v1351_v51 }
 0xc25   : > { %v1406_v54 = vpop.f32.mrf.mxu0 }
 0xc26   : > { %v1407_v55 = vadd.f32 %v1406_v54, %v1356_v53 }
 0xc27   : > { %v1780_v56 = vpop.f32.mrf.mxu0 }
 0xc28   : > { %1412 = vmax.xlane.f32.xlu0 %v1407_v55 }
 0xc29   : > { %v1409_v21 = vpop.f32.mrf.mxu0 }
 0xc2b   : > { %v1781_v57 = vpop.f32.mrf.mxu0 }
 0xcb1   : > { %v1413_v24 = vpop.xlane.xlu0 %1412 }
 0xcb2   : > { %v1414_v58 = vsub.f32 %v1407_v55, %v1413_v24 }
 0xcb4   : > { %v1415_v59 = vmul.f32 1.442695, %v1414_v58 }
 0xcb6   : > { %1913 = vpow2.f32 %v1415_v59 }
 0xcc3   : > { %v1914_v60 = vpop.eup %1913 }
 0xcc4   : > { %1417 = vadd.xlane.f32.xlu1 %v1914_v60 }
 0xd4d   : > { %v1418_v18 = vpop.xlane.xlu1 %1417 }
 0xd4e   : > { %1915 = vrcp.f32 %v1418_v18 }
 0xd5b   : > { %v1916_v19 = vpop.eup %1915 }
 0xd5c   : > { %v1420_v61 = vmul.f32 %v1916_v19, %v1914_v60 }
 0xd5e   : > { %1430 = vrot.lane.b32.xlu1 %v1420_v61, %s2075_s30  ;;  %1425 = vrot.lane.b32.xlu0 %v1420_v61, %s2076_s15  ;;  %1423 = vst.msk [vmem:[%s2529_s13] sm:$0x1] %vm1422_vm6, %v1420_v61  ;;  %s2001_s30 = sshll.u32 %s2082_s26, 4  ;;  %s2002_s30 = int_to_ptr.vmem [resolvable:$false] %s2001_s30 }
 0xd5f   : > { %s2003_s15 = scalar_lea.vmem %s2002_s30, 32  ;;  %p2004_p4 = scmp.lt.s32.totalorder %s2546_s25, %s2002_s30 }
 0xd60   : > { %p2005_p6 = scmp.lt.s32.totalorder %s2003_s15, %s1997_s21 }
 0xd62   : > { %1435 = vrot.lane.b32.xlu1 %v1420_v61, %s2077_s29  ;;  %1445 = vrot.lane.b32.xlu0 %v1420_v61, %s2078_s28  ;;  %p2006_p9 = por %p2005_p6, %p2004_p4 }
 0xd64   : > { %p2007_p12 = pnand %p2006_p9, %p2000_p2 }
 0xd66   : > { %1440 = vrot.lane.b32.xlu1 %v1420_v61, %s2079_s2  ;;  %1455 = vrot.lane.b32.xlu0 %v1420_v61, %s2080_s3 }
 0xd6a   : > { %1450 = vrot.lane.b32.xlu1 %v1420_v61, %s2081_s20 }
 0xdd0   : > { %v1431_v0 = vpop.permute.xlu1 %1430  ;;  %v1426_v62 = vpop.permute.xlu0 %1425 }
 0xdd1   : > { %1429 = vst.msk [vmem:[%s2529_s13 - $0x1] sm:$0x2] %vm1428_vm7, %v1426_v62 }
 0xdd2   : > { %1434 = vst.msk [vmem:[%s2529_s13 - $0x2] sm:$0x4] %vm1433_vm8, %v1431_v0 }
 0xdd4   : > { %v1436_v63 = vpop.permute.xlu1 %1435  ;;  %v1446_v1 = vpop.permute.xlu0 %1445 }
 0xdd5   : > { %1439 = vst.msk [vmem:[%s2529_s13 - $0x3] sm:$0x8] %vm1438_vm9, %v1436_v63 }
 0xdd8   : > { %v1441_v2 = vpop.permute.xlu1 %1440  ;;  %v1456_v4 = vpop.permute.xlu0 %1455 }
 0xdd9   : > { %1444 = vst.msk [vmem:[%s2529_s13 - $0x4] sm:$0x10] %vm1443_vm10, %v1441_v2 }
 0xdda   : > { %1449 = vst.msk [vmem:[%s2529_s13 - $0x5] sm:$0x20] %vm1448_vm11, %v1446_v1 }
 0xddc   : > { %v1451_v3 = vpop.permute.xlu1 %1450 }
 0xddd   : > { %1454 = vst.msk [vmem:[%s2529_s13 - $0x6] sm:$0x40] %vm1453_vm12, %v1451_v3 }
 0xdde   : > { %1459 = vst.msk [vmem:[%s2529_s13 - $0x7] sm:$0x80] %vm1458_vm13, %v1456_v4 }
 0xddf   : > { %2010 = shalt.err (!%p2007_p12)
}
 0xde0   : > { %s2011_s13 = scalar_lea.hbm %s2544_s16, 16  ;;  %s2015_s28 = scalar_lea.hbm %s2600_s11, 32 }
 0xde1   : > { %p2012_p3 = scmp.ne.s32.totalorder %s2544_s16, %s2011_s13  ;;  %p2016_p5 = scmp.lt.s32.totalorder %s2544_s16, %s2600_s11 }
 0xde2   : > { %p2017_p8 = scmp.lt.s32.totalorder %s2015_s28, %s2011_s13 }
 0xde3   : > { %p2013_p7 = pnand %p2012_p3, %p2628_p0 }
 0xde4   : > { %p2018_p11 = por %p2017_p8, %p2016_p5 }
 0xde5   : > { %p2014_p10 = pneg %p2013_p7 }
 0xde7   : > { %p2019_p13 = pnand %p2018_p11, %p2014_p10 }
 0xde9   : > { %2022 = shalt.err (!%p2019_p13)
}
 0xdea   : > { %1792 = dma.vmem_to_hbm [thread:$0]  (%p2628_p0), %s2546_s25, 16, %s2544_s16, %s1461_s22  }
 0xdeb PF: > { %s2629_s20 = sld [smem:[#allocation13_spill]]  ;;  %s1485_s23 = sand.u32 1, %s2053_s17  }
 0xdec   : > { %p2630_p1 = scmp.ne.s32.totalorder %s2614_s24, 0  ;;  %s1486_s27 = scalar_lea.sflag [#allocation4], %s1485_s23 }
 0xdf1   : > { %p2631_p2 = scmp.ge.s32.totalorder %s2629_s20, 2 }
 0xdf3   : > { %p1806_p4 = pnand %p2631_p2, %p2630_p1 }
 0xdf5   : > { %p1807_p6 = pneg %p1806_p4 }
 0xdf7   : > { %2048 = dma.done.wait (%p1807_p6), %s1486_s27, 16  }
 0xdf8   : > { %2050 = vsyncadd (%p1807_p6), %s1486_s27, 4294967280  ;;  %s2632_s20 = sld [smem:[#allocation14_spill]]  ;;  %s2635_s17 = smov %s2057_s18 }
 0xdf9   : > { %s2633_s12 = sld [smem:[#allocation12_spill]] }
 0xdfa   : > { %s2634_s19 = sld [smem:[#allocation15_spill]] }
 0xdfe   : > { %p25_p9 = scmp.ge.s32.totalorder %s2632_s20, 4  }
 0xdff   : > { %s2636_s18 = smov %s2633_s12 }
 0xe00   :  { %27 = sbr.rel (!%p25_p9) target bundleno = 9 (0x9), region = 119 }
 0xe05   :  { %1490 = vsyncpa [#allocation3], 1 }
 0xe06   :  { %1492 = vsyncpa [#allocation3 + $0x1], 1 }
 0xe07   :  { %1493 = vsyncpa [#allocation6], 1 }
 0xe08   :  { %1494 = vsyncpa [#allocation4], 1 }
 0xe09   :  { %1496 = vsyncpa [#allocation4 + $0x1], 1 }

</bundles_post_ra>
